<compile_context>
chip_gen: v5e
topology: v5e:2x2
jax: 0.10.0
libtpu: 0.0.40
codegen_flags: <defaults>
</compile_context>

<pallas_src>
import jax
import jax.numpy as jnp
from jax import lax
from jax.experimental import pallas as pl
from jax.experimental.pallas import tpu as pltpu

# ----------------------------- configuration --------------------------------
B = 2              # batch size
L = 16             # sequence length
E = 32             # args.embed_size  (WordRep feature size)
F = 16             # args.num_filter_maps
C = 5              # args.class_nums
ATTN_D = 256       # hard-coded in AttentionLayer
FFN = 128          # hard-coded ffn_size in MSLAN_ACG
FILTER_SIZES = (3, 5)        # args.filter_size = "3,5"  (args.conv_layer = 1)
NB = len(FILTER_SIZES)
KMAX = max(FILTER_SIZES)     # every conv kernel is zero-padded to KMAX taps
PAD = KMAX // 2              # shared symmetric input padding
N_NODES = 8                  # number of graph nodes = len(entity_ids)
ENTITY_NUM = 12              # graph-embedding vocabulary size
VOCAB = 40                   # word vocabulary size (len(w2ind)+2)
BN_EPS = 1e-5
F2 = NB * F                  # fused channel width (both branches)
AD2 = NB * ATTN_D            # fused attention width
C2 = NB * C                  # fused attention class width
D_FEAT = E + NB * F          # final1 input feature size
VEC_ROWS = 5 + B * C         # rows of the packed f32 vector table


# ------------------------------- fused kernel --------------------------------
def fused_forward_kernel(im0_ref, g2c_ref, wconv_ref, wattnT_ref, auT_ref,
                         f1wT_ref, fvec_ref, y_ref):
    """Fused MSLAN_ACG forward for the whole (folded) batch.

    im0_ref    : [B*L, KMAX*E]          bf16  im2col of the embedded input
    g2c_ref    : [C, E]                 f32   GCN rows for the C labels (hoisted)
    wconv_ref  : [KMAX*E + KMAX*2F, 2F] bf16  rows 0:KMAX*E = fused baseconv
                                              weight; rows KMAX*E+j*2F.. =
                                              residual-conv tap j (block-diag,
                                              BN1 scale folded)
    wattnT_ref : [2F, 2*ATTN_D]         bf16  block-diag attention W^T
    auT_ref    : [2*ATTN_D, 2C]         bf16  block-diag attention U^T
    f1wT_ref   : [D_FEAT, FFN]          bf16  final1 weight^T
    fvec_ref   : [5+B*C, FFN]           f32   rows 0..3 (lanes 0:2F): conv bias,
                                              BN0 scale, BN0 shift, BN1 shift;
                                              row 4: final1 bias; rows 5..:
                                              final2 weight tiled over batch
    y_ref      : [B*C, 1]               f32   logits (final2 bias added outside)
    """
    fvec = fvec_ref[...]
    b0, bn0s = fvec[0:1, 0:F2], fvec[1:2, 0:F2]
    bn0b, bn1b = fvec[2:3, 0:F2], fvec[3:4, 0:F2]
    f1b, f2w_rep = fvec[4:5, :], fvec[5:5 + B * C, :]
    wconv = wconv_ref[...]
    g2c = g2c_ref[...]

    # --- fused baseconv (both branches): tanh(conv + bias), then BN (eval) ---
    h = jnp.dot(im0_ref[...], wconv[0:KMAX * E, :],
                preferred_element_type=jnp.float32)              # [B*L, 2F]
    h = jnp.tanh(h + b0) * bn0s + bn0b

    # --- ResidualBlock: per-tap block-diag matmuls on sublane-shifted h ------
    zpad = jnp.zeros((PAD, F2), jnp.float32)
    r_parts = []
    for b in range(B):                                           # static unroll
        hb = h[b * L:(b + 1) * L]                                # [L, 2F]
        hp = jnp.concatenate([zpad, hb, zpad], axis=0)           # [L+2*PAD, 2F]
        acc = bn1b + hb                                          # BN1 shift + residual
        for j in range(KMAX):                                    # static unroll
            wj = wconv[KMAX * E + j * F2: KMAX * E + (j + 1) * F2, :]
            acc = acc + jnp.dot(hp[j:j + L, :].astype(jnp.bfloat16), wj,
                                preferred_element_type=jnp.float32)
        r_parts.append(jnp.tanh(acc))
    r = jnp.concatenate(r_parts, axis=0)                         # [B*L, 2F]
    rb = r.astype(jnp.bfloat16)

    # --- fused label attention (block-diag weights, no [L,256] transpose) ----
    zT = jnp.tanh(jnp.dot(rb, wattnT_ref[...],
                          preferred_element_type=jnp.float32))   # [B*L, 2*ATTN_D]
    sT = jnp.dot(zT.astype(jnp.bfloat16), auT_ref[...],
                 preferred_element_type=jnp.float32)             # [B*L, 2C]

    feat_parts = []
    for b in range(B):                                           # static unroll
        sb = sT[b * L:(b + 1) * L]                               # [L, 2C]
        sb = sb - jnp.max(sb, axis=0, keepdims=True)             # softmax over L
        pb = jnp.exp(sb)
        ab = pb / jnp.sum(pb, axis=0, keepdims=True)
        # V^T = A @ x^T : contract the L (sublane) axis of both operands.
        vfull = lax.dot_general(ab, r[b * L:(b + 1) * L],
                                (((0,), (0,)), ((), ())),
                                preferred_element_type=jnp.float32)   # [2C, 2F]
        feat_parts.append(jnp.concatenate(
            [g2c, vfull[0:C, 0:F], vfull[C:2 * C, F:F2]], axis=1))    # [C, D_FEAT]
    feat = jnp.concatenate(feat_parts, axis=0).astype(jnp.bfloat16)   # [B*C, D_FEAT]

    # --- classification head -------------------------------------------------
    hh = jnp.dot(feat, f1wT_ref[...],
                 preferred_element_type=jnp.float32) + f1b       # [B*C, FFN]
    hh = jnp.maximum(hh, 0.0)
    y_ref[...] = jnp.sum(f2w_rep * hh, axis=1, keepdims=True)    # [B*C, 1]


# ------------------------------ pallas wrapper --------------------------------
def mslan_acg_forward(params, x_tok, target, adj, entity_ids):
    p = params
    # WordRep: embedding gathers (no clean Pallas win at this size -> jnp.take);
    # embed_drop / dropout are identity in eval mode.
    xe = jnp.take(p["embed"], x_tok, axis=0)                     # [B, L, E]
    ne = jnp.take(p["graph_embed"], entity_ids, axis=0)          # [N, E]

    # im2col of the embedded input, built once in the wrapper (off the kernel
    # critical path) and shared by both filter-size branches.
    xpad = jnp.pad(xe, ((0, 0), (PAD, PAD), (0, 0)))
    im0 = jnp.concatenate([xpad[:, j:j + L, :] for j in range(KMAX)], axis=2)
    im0 = im0.reshape(B * L, KMAX * E).astype(jnp.bfloat16)      # [B*L, KMAX*E]

    # Batch-invariant 2-layer GCN hoisted to plain XLA (dropout = identity).
    adj_f = adj.astype(jnp.float32)
    g1 = jnp.maximum(adj_f @ (ne @ p["gc1_w"]) + p["gc1_b"], 0.0)
    g2 = adj_f @ (g1 @ p["gc2_w"]) + p["gc2_b"]
    g2c = g2[:C, :]                                              # [C, E]

    vmem_spec = pl.BlockSpec(memory_space=pltpu.MemorySpace.VMEM)
    y = pl.pallas_call(
        fused_forward_kernel,
        out_shape=jax.ShapeDtypeStruct((B * C, 1), jnp.float32),
        in_specs=[vmem_spec] * 7,
        out_specs=vmem_spec,
    )(im0, g2c, p["wconv"], p["wattnT"], p["auT"], p["f1wT"], p["fvec"])

    y_hat = y[:, 0].reshape(B, C) + p["f2b"]

    # BCEWithLogitsLoss (mean reduction) -- tiny scalar reduction kept in JAX.
    t = target.astype(jnp.float32)
    loss = jnp.mean(jnp.maximum(y_hat, 0.0) - y_hat * t
                    + jnp.log1p(jnp.exp(-jnp.abs(y_hat))))
    return y_hat, loss


# ------------------------------ parameters -----------------------------------
def _init_params(key):
    keys = iter(jax.random.split(key, 64))

    def nrm(shape, scale):
        return scale * jax.random.normal(next(keys), shape, jnp.float32)

    def bn_fold():
        gamma = 1.0 + nrm((F,), 0.05)
        beta = nrm((F,), 0.05)
        mean = nrm((F,), 0.05)
        var = jnp.abs(nrm((F,), 0.05)) + 1.0
        scale = gamma / jnp.sqrt(var + BN_EPS)
        return scale, beta - mean * scale

    def pad_taps(w, kmax):
        # w: [Cout, Cin, k] -> zero-pad taps to kmax (centered; equivalent to
        # the larger symmetric input padding PAD = kmax//2)
        cout, cin, k = w.shape
        off = (kmax - k) // 2
        return jnp.zeros((cout, cin, kmax), w.dtype).at[:, :, off:off + k].set(w)

    p = {}
    embed = nrm((VOCAB, E), 0.5)
    p["embed"] = embed.at[0].set(0.0)                # padding_idx = 0
    p["graph_embed"] = nrm((ENTITY_NUM, E), 0.5)

    w0_cols, w1_taps = [], []
    b0s, bn0ss, bn0bs, bn1bs = [], [], [], []
    wT_blocks, uT_blocks = [], []
    for k in FILTER_SIZES:
        w0 = pad_taps(nrm((F, E, k), 0.2), KMAX)     # baseconv weight [F,E,KMAX]
        b0 = nrm((F,), 0.1)                          # baseconv bias
        bn0_s, bn0_b = bn_fold()
        w1 = pad_taps(nrm((F, F, k), 0.2), KMAX)     # residual conv (no bias)
        bn1_s, bn1_b = bn_fold()
        w1 = w1 * bn1_s[:, None, None]               # fold BN1 scale into conv
        # im2col layouts: rows = tap-major, [tap*Cin + cin, cout]
        w0_cols.append(jnp.transpose(w0, (2, 1, 0)).reshape(KMAX * E, F))
        w1_taps.append(jnp.transpose(w1, (2, 1, 0)))             # [KMAX, F, F]
        b0s.append(b0); bn0ss.append(bn0_s); bn0bs.append(bn0_b); bn1bs.append(bn1_b)
        wT_blocks.append(nrm((ATTN_D, F), 0.1).T)    # attention W^T : [F, 256]
        uT_blocks.append(nrm((C, ATTN_D), 0.1).T)    # attention U^T : [256, C]

    # fused baseconv weight [KMAX*E, 2F] + block-diag residual taps [KMAX*2F, 2F]
    w0cat = jnp.concatenate(w0_cols, axis=1)
    w1_blk = jnp.zeros((KMAX, F2, F2), jnp.float32)
    wattnT = jnp.zeros((F2, AD2), jnp.float32)
    auT = jnp.zeros((AD2, C2), jnp.float32)
    for br in range(NB):
        w1_blk = w1_blk.at[:, br * F:(br + 1) * F, br * F:(br + 1) * F].set(w1_taps[br])
        wattnT = wattnT.at[br * F:(br + 1) * F,
                           br * ATTN_D:(br + 1) * ATTN_D].set(wT_blocks[br])
        auT = auT.at[br * ATTN_D:(br + 1) * ATTN_D,
                     br * C:(br + 1) * C].set(uT_blocks[br])
    p["wconv"] = jnp.concatenate(
        [w0cat, w1_blk.reshape(KMAX * F2, F2)], axis=0).astype(jnp.bfloat16)
    p["wattnT"] = wattnT.astype(jnp.bfloat16)
    p["auT"] = auT.astype(jnp.bfloat16)

    p["gc1_w"] = nrm((E, E), 0.2)
    p["gc1_b"] = nrm((1, E), 0.1)
    p["gc2_w"] = nrm((E, E), 0.2)
    p["gc2_b"] = nrm((1, E), 0.1)

    f1w = nrm((FFN, D_FEAT), 0.1)                    # torch Linear weight [out, in]
    f1b = nrm((FFN,), 0.1)
    f2w = nrm((C, FFN), 0.1)
    p["f1wT"] = f1w.T.astype(jnp.bfloat16)           # [D_FEAT, FFN]
    p["f2b"] = nrm((C,), 0.1)

    # packed f32 vector table (one DMA): per-channel conv/BN vectors,
    # final1 bias, and final2 weight tiled across the batch.
    fvec = jnp.zeros((VEC_ROWS, FFN), jnp.float32)
    fvec = fvec.at[0, 0:F2].set(jnp.concatenate(b0s))
    fvec = fvec.at[1, 0:F2].set(jnp.concatenate(bn0ss))
    fvec = fvec.at[2, 0:F2].set(jnp.concatenate(bn0bs))
    fvec = fvec.at[3, 0:F2].set(jnp.concatenate(bn1bs))
    fvec = fvec.at[4, :].set(f1b)
    fvec = fvec.at[5:5 + B * C, :].set(jnp.tile(f2w, (B, 1)))
    p["fvec"] = fvec
    return p


# --------------------------------- main ---------------------------------------
if __name__ == "__main__":
    root = jax.random.PRNGKey(0)
    kp, kx, kt, ka, ke = jax.random.split(root, 5)

    params = _init_params(kp)
    x_tok = jax.random.randint(kx, (B, L), 1, VOCAB)                      # token ids
    target = (jax.random.uniform(kt, (B, C)) > 0.5).astype(jnp.float32)   # multi-label target
    adj_raw = jax.random.uniform(ka, (N_NODES, N_NODES)) + jnp.eye(N_NODES)
    adj = adj_raw / jnp.sum(adj_raw, axis=1, keepdims=True)               # row-normalized adj
    entity_ids = jax.random.randint(ke, (N_NODES,), 0, ENTITY_NUM)

    fwd = jax.jit(mslan_acg_forward)
    y_hat, loss = fwd(params, x_tok, target, adj, entity_ids)
    jax.block_until_ready((y_hat, loss))
    assert y_hat.shape == (B, C) and loss.shape == ()
    print("KERNEL_OK")
</pallas_src>

<mosaic_0001>
module attributes {stable_mosaic.version = 11 : i64} {
  func.func @fused_forward_kernel(%arg0: memref<32x160xbf16, #tpu.memory_space<vmem>>, %arg1: memref<5x32xf32, #tpu.memory_space<vmem>>, %arg2: memref<320x32xbf16, #tpu.memory_space<vmem>>, %arg3: memref<32x512xbf16, #tpu.memory_space<vmem>>, %arg4: memref<512x10xbf16, #tpu.memory_space<vmem>>, %arg5: memref<64x128xbf16, #tpu.memory_space<vmem>>, %arg6: memref<15x128xf32, #tpu.memory_space<vmem>>, %arg7: memref<10x1xf32, #tpu.memory_space<vmem>>) attributes {dimension_semantics = [], scalar_prefetch = 0 : i64, scratch_operands = 0 : i64, tpu.core_type = #tpu.core_type<tc>} {
    %c0 = arith.constant 0 : index
    %c0_0 = arith.constant 0 : index
    %0 = vector.load %arg6[%c0, %c0_0] : memref<15x128xf32, #tpu.memory_space<vmem>>, vector<15x128xf32>
    %1 = vector.extract_strided_slice %0 {offsets = [0, 0], sizes = [1, 32], strides = [1, 1]} : vector<15x128xf32> to vector<1x32xf32>
    %2 = vector.extract_strided_slice %0 {offsets = [1, 0], sizes = [1, 32], strides = [1, 1]} : vector<15x128xf32> to vector<1x32xf32>
    %3 = vector.extract_strided_slice %0 {offsets = [2, 0], sizes = [1, 32], strides = [1, 1]} : vector<15x128xf32> to vector<1x32xf32>
    %4 = vector.extract_strided_slice %0 {offsets = [3, 0], sizes = [1, 32], strides = [1, 1]} : vector<15x128xf32> to vector<1x32xf32>
    %5 = vector.extract_strided_slice %0 {offsets = [4, 0], sizes = [1, 128], strides = [1, 1]} : vector<15x128xf32> to vector<1x128xf32>
    %6 = vector.extract_strided_slice %0 {offsets = [5, 0], sizes = [10, 128], strides = [1, 1]} : vector<15x128xf32> to vector<10x128xf32>
    %c0_1 = arith.constant 0 : index
    %c0_2 = arith.constant 0 : index
    %7 = vector.load %arg2[%c0_1, %c0_2] : memref<320x32xbf16, #tpu.memory_space<vmem>>, vector<320x32xbf16>
    %c0_3 = arith.constant 0 : index
    %c0_4 = arith.constant 0 : index
    %8 = vector.load %arg1[%c0_3, %c0_4] : memref<5x32xf32, #tpu.memory_space<vmem>>, vector<5x32xf32>
    %c0_5 = arith.constant 0 : index
    %c0_6 = arith.constant 0 : index
    %9 = vector.load %arg0[%c0_5, %c0_6] : memref<32x160xbf16, #tpu.memory_space<vmem>>, vector<32x160xbf16>
    %10 = vector.extract_strided_slice %7 {offsets = [0, 0], sizes = [160, 32], strides = [1, 1]} : vector<320x32xbf16> to vector<160x32xbf16>
    %cst = arith.constant dense<0.000000e+00> : vector<32x32xf32>
    %11 = tpu.matmul %9, %10, %cst {dimension_numbers = #tpu.dot_dimension_numbers<[1], [0], [0], [1], [0, 0, 1, 1], [], []>} : vector<32x160xbf16>, vector<160x32xbf16>, vector<32x32xf32> -> vector<32x32xf32>
    %12 = vector.broadcast %1 : vector<1x32xf32> to vector<32x32xf32>
    %13 = arith.addf %11, %12 : vector<32x32xf32>
    %14 = math.tanh %13 : vector<32x32xf32>
    %15 = vector.broadcast %2 : vector<1x32xf32> to vector<32x32xf32>
    %16 = arith.mulf %14, %15 : vector<32x32xf32>
    %17 = vector.broadcast %3 : vector<1x32xf32> to vector<32x32xf32>
    %18 = arith.addf %16, %17 : vector<32x32xf32>
    %cst_7 = arith.constant 0.000000e+00 : f32
    %19 = vector.broadcast %cst_7 : f32 to vector<2x32xf32>
    %20 = vector.extract_strided_slice %18 {offsets = [0, 0], sizes = [16, 32], strides = [1, 1]} : vector<32x32xf32> to vector<16x32xf32>
    %21 = tpu.concatenate %19, %20, %19 in 0 : vector<2x32xf32>, vector<16x32xf32>, vector<2x32xf32> -> vector<20x32xf32>
    %22 = vector.broadcast %4 : vector<1x32xf32> to vector<16x32xf32>
    %23 = arith.addf %22, %20 : vector<16x32xf32>
    %24 = vector.extract_strided_slice %7 {offsets = [160, 0], sizes = [32, 32], strides = [1, 1]} : vector<320x32xbf16> to vector<32x32xbf16>
    %25 = vector.extract_strided_slice %21 {offsets = [0, 0], sizes = [16, 32], strides = [1, 1]} : vector<20x32xf32> to vector<16x32xf32>
    %26 = arith.truncf %25 : vector<16x32xf32> to vector<16x32xbf16>
    %cst_8 = arith.constant dense<0.000000e+00> : vector<16x32xf32>
    %27 = tpu.matmul %26, %24, %cst_8 {dimension_numbers = #tpu.dot_dimension_numbers<[1], [0], [0], [1], [0, 0, 1, 1], [], []>} : vector<16x32xbf16>, vector<32x32xbf16>, vector<16x32xf32> -> vector<16x32xf32>
    %28 = arith.addf %23, %27 : vector<16x32xf32>
    %29 = vector.extract_strided_slice %7 {offsets = [192, 0], sizes = [32, 32], strides = [1, 1]} : vector<320x32xbf16> to vector<32x32xbf16>
    %30 = vector.extract_strided_slice %21 {offsets = [1, 0], sizes = [16, 32], strides = [1, 1]} : vector<20x32xf32> to vector<16x32xf32>
    %31 = arith.truncf %30 : vector<16x32xf32> to vector<16x32xbf16>
    %cst_9 = arith.constant dense<0.000000e+00> : vector<16x32xf32>
    %32 = tpu.matmul %31, %29, %cst_9 {dimension_numbers = #tpu.dot_dimension_numbers<[1], [0], [0], [1], [0, 0, 1, 1], [], []>} : vector<16x32xbf16>, vector<32x32xbf16>, vector<16x32xf32> -> vector<16x32xf32>
    %33 = arith.addf %28, %32 : vector<16x32xf32>
    %34 = vector.extract_strided_slice %7 {offsets = [224, 0], sizes = [32, 32], strides = [1, 1]} : vector<320x32xbf16> to vector<32x32xbf16>
    %35 = vector.extract_strided_slice %21 {offsets = [2, 0], sizes = [16, 32], strides = [1, 1]} : vector<20x32xf32> to vector<16x32xf32>
    %36 = arith.truncf %35 : vector<16x32xf32> to vector<16x32xbf16>
    %cst_10 = arith.constant dense<0.000000e+00> : vector<16x32xf32>
    %37 = tpu.matmul %36, %34, %cst_10 {dimension_numbers = #tpu.dot_dimension_numbers<[1], [0], [0], [1], [0, 0, 1, 1], [], []>} : vector<16x32xbf16>, vector<32x32xbf16>, vector<16x32xf32> -> vector<16x32xf32>
    %38 = arith.addf %33, %37 : vector<16x32xf32>
    %39 = vector.extract_strided_slice %7 {offsets = [256, 0], sizes = [32, 32], strides = [1, 1]} : vector<320x32xbf16> to vector<32x32xbf16>
    %40 = vector.extract_strided_slice %21 {offsets = [3, 0], sizes = [16, 32], strides = [1, 1]} : vector<20x32xf32> to vector<16x32xf32>
    %41 = arith.truncf %40 : vector<16x32xf32> to vector<16x32xbf16>
    %cst_11 = arith.constant dense<0.000000e+00> : vector<16x32xf32>
    %42 = tpu.matmul %41, %39, %cst_11 {dimension_numbers = #tpu.dot_dimension_numbers<[1], [0], [0], [1], [0, 0, 1, 1], [], []>} : vector<16x32xbf16>, vector<32x32xbf16>, vector<16x32xf32> -> vector<16x32xf32>
    %43 = arith.addf %38, %42 : vector<16x32xf32>
    %44 = vector.extract_strided_slice %7 {offsets = [288, 0], sizes = [32, 32], strides = [1, 1]} : vector<320x32xbf16> to vector<32x32xbf16>
    %45 = vector.extract_strided_slice %21 {offsets = [4, 0], sizes = [16, 32], strides = [1, 1]} : vector<20x32xf32> to vector<16x32xf32>
    %46 = arith.truncf %45 : vector<16x32xf32> to vector<16x32xbf16>
    %cst_12 = arith.constant dense<0.000000e+00> : vector<16x32xf32>
    %47 = tpu.matmul %46, %44, %cst_12 {dimension_numbers = #tpu.dot_dimension_numbers<[1], [0], [0], [1], [0, 0, 1, 1], [], []>} : vector<16x32xbf16>, vector<32x32xbf16>, vector<16x32xf32> -> vector<16x32xf32>
    %48 = arith.addf %43, %47 : vector<16x32xf32>
    %49 = math.tanh %48 : vector<16x32xf32>
    %50 = vector.extract_strided_slice %18 {offsets = [16, 0], sizes = [16, 32], strides = [1, 1]} : vector<32x32xf32> to vector<16x32xf32>
    %51 = tpu.concatenate %19, %50, %19 in 0 : vector<2x32xf32>, vector<16x32xf32>, vector<2x32xf32> -> vector<20x32xf32>
    %52 = vector.broadcast %4 : vector<1x32xf32> to vector<16x32xf32>
    %53 = arith.addf %52, %50 : vector<16x32xf32>
    %54 = vector.extract_strided_slice %7 {offsets = [160, 0], sizes = [32, 32], strides = [1, 1]} : vector<320x32xbf16> to vector<32x32xbf16>
    %55 = vector.extract_strided_slice %51 {offsets = [0, 0], sizes = [16, 32], strides = [1, 1]} : vector<20x32xf32> to vector<16x32xf32>
    %56 = arith.truncf %55 : vector<16x32xf32> to vector<16x32xbf16>
    %cst_13 = arith.constant dense<0.000000e+00> : vector<16x32xf32>
    %57 = tpu.matmul %56, %54, %cst_13 {dimension_numbers = #tpu.dot_dimension_numbers<[1], [0], [0], [1], [0, 0, 1, 1], [], []>} : vector<16x32xbf16>, vector<32x32xbf16>, vector<16x32xf32> -> vector<16x32xf32>
    %58 = arith.addf %53, %57 : vector<16x32xf32>
    %59 = vector.extract_strided_slice %7 {offsets = [192, 0], sizes = [32, 32], strides = [1, 1]} : vector<320x32xbf16> to vector<32x32xbf16>
    %60 = vector.extract_strided_slice %51 {offsets = [1, 0], sizes = [16, 32], strides = [1, 1]} : vector<20x32xf32> to vector<16x32xf32>
    %61 = arith.truncf %60 : vector<16x32xf32> to vector<16x32xbf16>
    %cst_14 = arith.constant dense<0.000000e+00> : vector<16x32xf32>
    %62 = tpu.matmul %61, %59, %cst_14 {dimension_numbers = #tpu.dot_dimension_numbers<[1], [0], [0], [1], [0, 0, 1, 1], [], []>} : vector<16x32xbf16>, vector<32x32xbf16>, vector<16x32xf32> -> vector<16x32xf32>
    %63 = arith.addf %58, %62 : vector<16x32xf32>
    %64 = vector.extract_strided_slice %7 {offsets = [224, 0], sizes = [32, 32], strides = [1, 1]} : vector<320x32xbf16> to vector<32x32xbf16>
    %65 = vector.extract_strided_slice %51 {offsets = [2, 0], sizes = [16, 32], strides = [1, 1]} : vector<20x32xf32> to vector<16x32xf32>
    %66 = arith.truncf %65 : vector<16x32xf32> to vector<16x32xbf16>
    %cst_15 = arith.constant dense<0.000000e+00> : vector<16x32xf32>
    %67 = tpu.matmul %66, %64, %cst_15 {dimension_numbers = #tpu.dot_dimension_numbers<[1], [0], [0], [1], [0, 0, 1, 1], [], []>} : vector<16x32xbf16>, vector<32x32xbf16>, vector<16x32xf32> -> vector<16x32xf32>
    %68 = arith.addf %63, %67 : vector<16x32xf32>
    %69 = vector.extract_strided_slice %7 {offsets = [256, 0], sizes = [32, 32], strides = [1, 1]} : vector<320x32xbf16> to vector<32x32xbf16>
    %70 = vector.extract_strided_slice %51 {offsets = [3, 0], sizes = [16, 32], strides = [1, 1]} : vector<20x32xf32> to vector<16x32xf32>
    %71 = arith.truncf %70 : vector<16x32xf32> to vector<16x32xbf16>
    %cst_16 = arith.constant dense<0.000000e+00> : vector<16x32xf32>
    %72 = tpu.matmul %71, %69, %cst_16 {dimension_numbers = #tpu.dot_dimension_numbers<[1], [0], [0], [1], [0, 0, 1, 1], [], []>} : vector<16x32xbf16>, vector<32x32xbf16>, vector<16x32xf32> -> vector<16x32xf32>
    %73 = arith.addf %68, %72 : vector<16x32xf32>
    %74 = vector.extract_strided_slice %7 {offsets = [288, 0], sizes = [32, 32], strides = [1, 1]} : vector<320x32xbf16> to vector<32x32xbf16>
    %75 = vector.extract_strided_slice %51 {offsets = [4, 0], sizes = [16, 32], strides = [1, 1]} : vector<20x32xf32> to vector<16x32xf32>
    %76 = arith.truncf %75 : vector<16x32xf32> to vector<16x32xbf16>
    %cst_17 = arith.constant dense<0.000000e+00> : vector<16x32xf32>
    %77 = tpu.matmul %76, %74, %cst_17 {dimension_numbers = #tpu.dot_dimension_numbers<[1], [0], [0], [1], [0, 0, 1, 1], [], []>} : vector<16x32xbf16>, vector<32x32xbf16>, vector<16x32xf32> -> vector<16x32xf32>
    %78 = arith.addf %73, %77 : vector<16x32xf32>
    %79 = math.tanh %78 : vector<16x32xf32>
    %80 = tpu.concatenate %49, %79 in 0 : vector<16x32xf32>, vector<16x32xf32> -> vector<32x32xf32>
    %81 = arith.truncf %80 : vector<32x32xf32> to vector<32x32xbf16>
    %c0_18 = arith.constant 0 : index
    %c0_19 = arith.constant 0 : index
    %82 = vector.load %arg3[%c0_18, %c0_19] : memref<32x512xbf16, #tpu.memory_space<vmem>>, vector<32x512xbf16>
    %cst_20 = arith.constant dense<0.000000e+00> : vector<32x512xf32>
    %83 = tpu.matmul %81, %82, %cst_20 {dimension_numbers = #tpu.dot_dimension_numbers<[1], [0], [0], [1], [0, 0, 1, 1], [], []>} : vector<32x32xbf16>, vector<32x512xbf16>, vector<32x512xf32> -> vector<32x512xf32>
    %84 = math.tanh %83 : vector<32x512xf32>
    %85 = arith.truncf %84 : vector<32x512xf32> to vector<32x512xbf16>
    %c0_21 = arith.constant 0 : index
    %c0_22 = arith.constant 0 : index
    %86 = vector.load %arg4[%c0_21, %c0_22] : memref<512x10xbf16, #tpu.memory_space<vmem>>, vector<512x10xbf16>
    %cst_23 = arith.constant dense<0.000000e+00> : vector<32x10xf32>
    %87 = tpu.matmul %85, %86, %cst_23 {dimension_numbers = #tpu.dot_dimension_numbers<[1], [0], [0], [1], [0, 0, 1, 1], [], []>} : vector<32x512xbf16>, vector<512x10xbf16>, vector<32x10xf32> -> vector<32x10xf32>
    %88 = vector.extract_strided_slice %87 {offsets = [0, 0], sizes = [16, 10], strides = [1, 1]} : vector<32x10xf32> to vector<16x10xf32>
    %cst_24 = arith.constant dense<0xFF800000> : vector<10xf32>
    %89 = vector.multi_reduction <maximumf>, %88, %cst_24 [0] : vector<16x10xf32> to vector<10xf32>
    %90 = vector.shape_cast %89 : vector<10xf32> to vector<1x10xf32>
    %91 = vector.broadcast %90 : vector<1x10xf32> to vector<16x10xf32>
    %92 = arith.subf %88, %91 : vector<16x10xf32>
    %93 = math.exp %92 : vector<16x10xf32>
    %cst_25 = arith.constant dense<0.000000e+00> : vector<10xf32>
    %94 = vector.multi_reduction <add>, %93, %cst_25 [0] : vector<16x10xf32> to vector<10xf32>
    %95 = vector.shape_cast %94 : vector<10xf32> to vector<1x10xf32>
    %96 = vector.broadcast %95 : vector<1x10xf32> to vector<16x10xf32>
    %97 = arith.divf %93, %96 : vector<16x10xf32>
    %98 = vector.extract_strided_slice %80 {offsets = [0, 0], sizes = [16, 32], strides = [1, 1]} : vector<32x32xf32> to vector<16x32xf32>
    %cst_26 = arith.constant dense<0.000000e+00> : vector<10x32xf32>
    %99 = tpu.matmul %97, %98, %cst_26 {dimension_numbers = #tpu.dot_dimension_numbers<[0], [0], [1], [1], [0, 1, 1, 1], [], []>} : vector<16x10xf32>, vector<16x32xf32>, vector<10x32xf32> -> vector<10x32xf32>
    %100 = vector.extract_strided_slice %99 {offsets = [0, 0], sizes = [5, 16], strides = [1, 1]} : vector<10x32xf32> to vector<5x16xf32>
    %101 = vector.extract_strided_slice %99 {offsets = [5, 16], sizes = [5, 16], strides = [1, 1]} : vector<10x32xf32> to vector<5x16xf32>
    %102 = tpu.concatenate %8, %100, %101 in 1 : vector<5x32xf32>, vector<5x16xf32>, vector<5x16xf32> -> vector<5x64xf32>
    %103 = vector.extract_strided_slice %87 {offsets = [16, 0], sizes = [16, 10], strides = [1, 1]} : vector<32x10xf32> to vector<16x10xf32>
    %cst_27 = arith.constant dense<0xFF800000> : vector<10xf32>
    %104 = vector.multi_reduction <maximumf>, %103, %cst_27 [0] : vector<16x10xf32> to vector<10xf32>
    %105 = vector.shape_cast %104 : vector<10xf32> to vector<1x10xf32>
    %106 = vector.broadcast %105 : vector<1x10xf32> to vector<16x10xf32>
    %107 = arith.subf %103, %106 : vector<16x10xf32>
    %108 = math.exp %107 : vector<16x10xf32>
    %cst_28 = arith.constant dense<0.000000e+00> : vector<10xf32>
    %109 = vector.multi_reduction <add>, %108, %cst_28 [0] : vector<16x10xf32> to vector<10xf32>
    %110 = vector.shape_cast %109 : vector<10xf32> to vector<1x10xf32>
    %111 = vector.broadcast %110 : vector<1x10xf32> to vector<16x10xf32>
    %112 = arith.divf %108, %111 : vector<16x10xf32>
    %113 = vector.extract_strided_slice %80 {offsets = [16, 0], sizes = [16, 32], strides = [1, 1]} : vector<32x32xf32> to vector<16x32xf32>
    %cst_29 = arith.constant dense<0.000000e+00> : vector<10x32xf32>
    %114 = tpu.matmul %112, %113, %cst_29 {dimension_numbers = #tpu.dot_dimension_numbers<[0], [0], [1], [1], [0, 1, 1, 1], [], []>} : vector<16x10xf32>, vector<16x32xf32>, vector<10x32xf32> -> vector<10x32xf32>
    %115 = vector.extract_strided_slice %114 {offsets = [0, 0], sizes = [5, 16], strides = [1, 1]} : vector<10x32xf32> to vector<5x16xf32>
    %116 = vector.extract_strided_slice %114 {offsets = [5, 16], sizes = [5, 16], strides = [1, 1]} : vector<10x32xf32> to vector<5x16xf32>
    %117 = tpu.concatenate %8, %115, %116 in 1 : vector<5x32xf32>, vector<5x16xf32>, vector<5x16xf32> -> vector<5x64xf32>
    %118 = tpu.concatenate %102, %117 in 0 : vector<5x64xf32>, vector<5x64xf32> -> vector<10x64xf32>
    %119 = arith.truncf %118 : vector<10x64xf32> to vector<10x64xbf16>
    %c0_30 = arith.constant 0 : index
    %c0_31 = arith.constant 0 : index
    %120 = vector.load %arg5[%c0_30, %c0_31] : memref<64x128xbf16, #tpu.memory_space<vmem>>, vector<64x128xbf16>
    %cst_32 = arith.constant dense<0.000000e+00> : vector<10x128xf32>
    %121 = tpu.matmul %119, %120, %cst_32 {dimension_numbers = #tpu.dot_dimension_numbers<[1], [0], [0], [1], [0, 0, 1, 1], [], []>} : vector<10x64xbf16>, vector<64x128xbf16>, vector<10x128xf32> -> vector<10x128xf32>
    %122 = vector.broadcast %5 : vector<1x128xf32> to vector<10x128xf32>
    %123 = arith.addf %121, %122 : vector<10x128xf32>
    %cst_33 = arith.constant 0.000000e+00 : f32
    %124 = vector.broadcast %cst_33 : f32 to vector<10x128xf32>
    %125 = arith.maximumf %123, %124 : vector<10x128xf32>
    %126 = arith.mulf %6, %125 : vector<10x128xf32>
    %cst_34 = arith.constant dense<0.000000e+00> : vector<10xf32>
    %127 = vector.multi_reduction <add>, %126, %cst_34 [1] : vector<10x128xf32> to vector<10xf32>
    %128 = vector.shape_cast %127 : vector<10xf32> to vector<10x1xf32>
    %c0_35 = arith.constant 0 : index
    %c0_36 = arith.constant 0 : index
    %129 = vector.load %arg7[%c0_35, %c0_36] : memref<10x1xf32, #tpu.memory_space<vmem>>, vector<10x1xf32>
    tpu.vector_store %arg7[%c0_35, %c0_36], %128 {strides = array<i32>} : memref<10x1xf32, #tpu.memory_space<vmem>>, vector<10x1xf32>,
    return
  }
}

</mosaic_0001>

<bundles_post_ra>
// kernel: squeeze.1
= control target key start
LH: loop header
LB: loop body
LE: loop exit
PB: predicated region body
PF: predicated region fallthrough
CT: control target
= control target key end

     0   :  { %vm7_vm0 = vcmask 39936   ;;  %s39_s0 = inlined_call_operand.vmem [shape: f32[10], index: 0, kind: input, shape index: {}]   ;;  %s40_s1 = inlined_call_operand.vmem [shape: f32[2,5], index: 1, kind: output, shape index: {}]  }
   0x1   :  { %v4_v0 = vld [vmem:[%s39_s0] sm:$0x1]  ;;  %s22_s0 = smov 123  }
   0x2   :  { %5 = vst [vmem:[#allocation1] sm:$0x1] %v4_v0 }
   0x9   :  { %v9_v1 = vld [vmem:[#allocation1] sm:$0x1]  }
   0xa   :  { %v6_v2 = vld [vmem:[#allocation1] sm:$0x1]   ;;  %10 = vrot.lane.b32.xlu0 %v9_v1, %s22_s0 }
   0xb   :  { %8 = vst.msk [vmem:[#allocation0] sm:$0x1] %vm7_vm0, %v6_v2  }
  0x7c   :  { %v11_v3 = vpop.permute.xlu0 %10  }
  0x7d   :  { %14 = vst.msk [vmem:[#allocation0 + $0x1] sm:$0x1] %vm7_vm0, %v11_v3  }
  0x84   :  { %v17_v4 = vld [vmem:[#allocation0] sm:$0x3] }
  0x85   :  { %20 = vst [vmem:[%s40_s1] sm:$0x3] %v17_v4 }

// kernel: mslan_acg_forward.1
= control target key start
LH: loop header
LB: loop body
LE: loop exit
PB: predicated region body
PF: predicated region fallthrough
CT: control target
= control target key end

     0   :  { %vm153_vm0 = vcmask 261120   ;;  %vm214_vm1 = vcmask 1041408   ;;  %vm380_vm2 = vcmask 1045504   ;;  %vm259_vm3 = vsmask.f32 7424  ;;  %s1800_s11 = smov 32   ;;  %s2206_s2 = inlined_call_operand.vmem [shape: bf16[320,32], index: 2, kind: input, shape index: {}]   ;;  %s2207_s0 = inlined_call_operand.vmem [shape: bf16[32,160], index: 0, kind: input, shape index: {}]   ;;  %s2208_s6 = inlined_call_operand.vmem [shape: f32[15,128], index: 6, kind: input, shape index: {}]   ;;  %s2209_s3 = inlined_call_operand.vmem [shape: bf16[32,512], index: 3, kind: input, shape index: {}]   ;;  %s2210_s4 = inlined_call_operand.vmem [shape: bf16[512,10], index: 4, kind: input, shape index: {}]   ;;  %s2211_s5 = inlined_call_operand.vmem [shape: bf16[64,128], index: 5, kind: input, shape index: {}]   ;;  %s2212_s1 = inlined_call_operand.vmem [shape: f32[5,32], index: 1, kind: input, shape index: {}]   ;;  %s2213_s7 = inlined_call_operand.vmem [shape: f32[10,1], index: 7, kind: output, shape index: {}]  }
   0x1   :  { %v1664_v0 = vld [vmem:[%s2206_s2 + $0x38] sm:$0xff]  ;;  %v1666_v1 = vld [vmem:[%s2206_s2 + $0x48] sm:$0xff]  ;;  %v1663_v2 = vld [vmem:[%s2206_s2 + $0x30] sm:$0xff]  ;;  %vm304_vm4 = vcmask 1046528   ;;  %vm339_vm5 = vsmask.f32 6400 }
   0x2   :  { %160 = vmatpush.bf16.msra.mxu0 %v1664_v0  ;;  %185 = vmatpush.bf16.msra.mxu1 %v1666_v1  ;;  %v1665_v3 = vld [vmem:[%s2206_s2 + $0x40] sm:$0xff]  ;;  %v1364_v5 = vld [vmem:[%s2207_s0 + $0x8] sm:$0xf0]  ;;  %v1660_v9 = vld [vmem:[%s2206_s2 + $0x18] sm:$0xff]  ;;  %vm1044_vm6 = vcmask 80896   ;;  %vm1117_vm15 = vcmask 130048  }
   0x3   :  { %v1677_v4 = vld [vmem:[%s2207_s0 + $0x4] sm:$0xf]  ;;  %v1662_v6 = vld [vmem:[%s2206_s2 + $0x28] sm:$0xff]  ;;  %v1659_v10 = vld [vmem:[%s2206_s2 + $0x10] sm:$0xff] }
   0x4   :  { %v1367_v7 = vor.u32 %v1677_v4, %v1364_v5  ;;  %v1661_v8 = vld [vmem:[%s2206_s2 + $0x20] sm:$0xff]  ;;  %v1679_v11 = vld [vmem:[%s2207_s0 + $0x14] sm:$0xf]  ;;  %v1372_v12 = vld [vmem:[%s2207_s0 + $0x18] sm:$0xf0] }
   0x5   :  { %v1658_v13 = vld [vmem:[%s2206_s2 + $0x8] sm:$0xff]  ;;  %v1375_v14 = vor.u32 %v1679_v11, %v1372_v12  ;;  %v1657_v15 = vld [vmem:[%s2206_s2] sm:$0xff]  ;;  %v1370_v19 = vld [vmem:[%s2207_s0 + $0x10] sm:$0xf] }
   0x6   :  { %161 = vmatpush.bf16.msra.mxu0 %v1663_v2  ;;  %186 = vmatpush.bf16.msra.mxu1 %v1665_v3  ;;  %v1362_v16 = vld [vmem:[%s2207_s0] sm:$0xf]  ;;  %v1678_v17 = vld [vmem:[%s2207_s0 + $0x4] sm:$0xf0]  ;;  %v1680_v20 = vld [vmem:[%s2207_s0 + $0x14] sm:$0xf0] }
   0x7   :  { %v1363_v18 = vor.u32 %v1678_v17, %v1362_v16  ;;  %v1371_v21 = vor.u32 %v1680_v20, %v1370_v19  ;;  %v1900_v22 = vld [vmem:[%s2206_s2 + $0x58] sm:$0xff]  ;;  %v1911_v24 = vld [vmem:[%s2206_s2 + $0x50] sm:$0xff]  ;;  %v1917_v25 = vld [vmem:[%s2208_s6] sm:$0xff] }
   0x8   :  { %248 = vmatpush.bf16.msra.mxu2 %v1900_v22  ;;  %v1906_v23 = vld [vmem:[%s2206_s2 + $0x98] sm:$0xff]  ;;  %v1923_v26 = vld [vmem:[%s2206_s2 + $0x68] sm:$0xff]  ;;  %v1928_v27 = vld [vmem:[%s2206_s2 + $0x90] sm:$0xff]  ;;  %v74_v29 = vperm.slane %v1917_v25, 0  ;;  %v202_v39 = vperm.slane %v1917_v25, 1  ;;  %v207_v45 = vperm.slane %v1917_v25, 2 }
   0x9   :  { %1416 = vmatmul.msk.bf16.vlgmr.msra.gmra.mxu1 %vm153_vm0, %v1367_v7  ;;  %292 = vmatpush.bf16.msra.mxu3 %v1923_v26  ;;  %v1936_v30 = vld [vmem:[%s2206_s2 + $0x60] sm:$0xff]  ;;  %v1672_v34 = vld [vmem:[%s2206_s2 + $0x78] sm:$0xff]  ;;  %v1671_v38 = vld [vmem:[%s2206_s2 + $0x70] sm:$0xff] }
   0xa   :  { %162 = vmatpush.bf16.msra.mxu0 %v1662_v6  ;;  %405 = vmatpush.bf16.msrb.mxu1 %v1906_v23  ;;  %v1949_v42 = vld [vmem:[%s2206_s2 + $0x88] sm:$0xff]  ;;  %v1955_v43 = vld [vmem:[%s2206_s2 + $0x80] sm:$0xff] }
   0xc   :  { %249 = vmatpush.bf16.msra.mxu2 %v1911_v24 }
   0xd   :  { %293 = vmatpush.bf16.msra.mxu3 %v1936_v30 }
   0xe   :  { %163 = vmatpush.bf16.msra.mxu0 %v1661_v8  ;;  %406 = vmatpush.bf16.msrb.mxu1 %v1928_v27 }
  0x10   :  { %329 = vmatpush.bf16.msrb.mxu2 %v1672_v34 }
  0x11   :  { %370 = vmatpush.bf16.msrb.mxu3 %v1949_v42 }
  0x12   :  { %164 = vmatpush.bf16.msra.mxu0 %v1660_v9  ;;  %494 = vmatpush.bf16.msra.mxu1 %v1672_v34 }
  0x14   :  { %330 = vmatpush.bf16.msrb.mxu2 %v1671_v38 }
  0x15   :  { %371 = vmatpush.bf16.msrb.mxu3 %v1955_v43 }
  0x16   :  { %165 = vmatpush.bf16.msra.mxu0 %v1659_v10  ;;  %495 = vmatpush.bf16.msra.mxu1 %v1671_v38 }
  0x19   :  { %1417 = vmatmul.msk.bf16.gmra.mxu1 %vm153_vm0, %v1375_v14 }
  0x1a   :  { %166 = vmatpush.bf16.msra.mxu0 %v1658_v13 }
  0x1e   :  { %167 = vmatpush.bf16.msra.mxu0 %v1657_v15 }
  0x21   :  { %168 = vmatmul.bf16.vlgmr.msra.gmra.mxu0 %v1363_v18 }
  0x31   :  { %173 = vmatmul.bf16.gmra.mxu0 %v1371_v21 }
  0x86   :  { %v188_v28 = vpop.f32.mrf.mxu1 }
  0x8e   :  { %v190_v35 = vpop.f32.mrf.mxu1 }
  0x96   :  { %v193_v46 = vpop.f32.mrf.mxu1 }
  0x9e   :  { %v169_v31 = vpop.f32.mrf.mxu0  ;;  %v195_v57 = vpop.f32.mrf.mxu1 }
  0x9f   :  { %v170_v32 = vadd.f32 %v169_v31, %v74_v29 }
  0xa1   :  { %v189_v33 = vadd.f32 %v188_v28, %v170_v32 }
  0xa3   :  { %1739 = vtanh.f32 %v189_v33 }
  0xa6   :  { %v171_v36 = vpop.f32.mrf.mxu0 }
  0xa7   :  { %v172_v37 = vadd.f32 %v171_v36, %v74_v29 }
  0xa9   :  { %v1740_v40 = vpop.eup %1739  ;;  %v191_v41 = vadd.f32 %v190_v35, %v172_v37 }
  0xaa   :  { %v203_v44 = vmul.f32 %v1740_v40, %v202_v39 }
  0xab   :  { %1741 = vtanh.f32 %v191_v41 }
  0xac   :  { %v1959_v49 = vadd.f32 %v207_v45, %v203_v44 }
  0xae   :  { %v174_v47 = vpop.f32.mrf.mxu0  ;;  %v215_v53 = vrot.slane %v1959_v49, 6 }
  0xaf   :  { %v175_v48 = vadd.f32 %v174_v47, %v74_v29 }
  0xb0   :  { %v221_v61 = vsel %vm214_vm1, 0.0, %v215_v53 }
  0xb1   :  { %v1742_v50 = vpop.eup %1741  ;;  %v194_v51 = vadd.f32 %v193_v46, %v175_v48 }
  0xb2   :  { %v204_v52 = vmul.f32 %v1742_v50, %v202_v39 }
  0xb3   :  { %1743 = vtanh.f32 %v194_v51 }
  0xb4   :  { %v1962_v54 = vadd.f32 %v207_v45, %v204_v52 }
  0xb6   :  { %v216_v55 = vrot.slane %v1962_v54, 6  ;;  %v176_v56 = vpop.f32.mrf.mxu0 }
  0xb7   :  { %v177_v58 = vadd.f32 %v176_v56, %v74_v29 }
  0xb8   :  { %v222_v59 = vsel %vm214_vm1, %v216_v55, 0.0  ;;  %v217_v60 = vsel %vm214_vm1, %v215_v53, %v216_v55 }
  0xb9   :  { %v1744_v62 = vpop.eup %1743  ;;  %v196_v63 = vadd.f32 %v195_v57, %v177_v58  ;;  %v226_v0 = vpack.c.bf16 %v217_v60, %v221_v61  ;;  %v258_v1 = vpack.c.bf16 %v222_v59, %v222_v59  ;;  %v1486_v59 = vld [vmem:[%s2209_s3 + $0x20] sm:$0xf]  ;;  %v1687_v60 = vld [vmem:[%s2209_s3 + $0x2c] sm:$0xf0] }
  0xba   :  { %v205_v2 = vmul.f32 %v1744_v62, %v202_v39  ;;  %v1487_v61 = vor.u32 %v1687_v60, %v1486_v59  ;;  %v1470_v62 = vld [vmem:[%s2209_s3] sm:$0xf] }
  0xbb   :  { %1745 = vtanh.f32 %v196_v63  ;;  %1426 = vmatmul.msk.bf16.vlgmr.msra.gmra.mxu2 %vm153_vm0, %v226_v0  ;;  %v381_v3 = vrot.slane %v226_v0, 2  ;;  %v382_v4 = vrot.slane %v258_v1, 2  ;;  %v262_v5 = vshll.u32 %v226_v0, 16  ;;  %v1683_v63 = vld [vmem:[%s2209_s3 + $0xc] sm:$0xf0] }
  0xbc   :  { %v267_v6 = vshll.u32 %v258_v1, 16  ;;  %439 = vmatpush.bf16.msra.mxu2 %v1900_v22  ;;  %v1971_v8 = vadd.f32 %v207_v45, %v205_v2  ;;  %v260_v9 = vshrl.u32 %v226_v0, 16  ;;  %v305_v18 = vrot.slane %v226_v0, 1  ;;  %618 = vmatpush.bf16.msrb.mxu0 %v1487_v61  ;;  %v1695_v2 = vld [vmem:[%s2210_s4 + $0x30] sm:$0xff] }
  0xbd   :  { %v383_v7 = vsel %vm380_vm2, %v381_v3, %v382_v4  ;;  %v264_v10 = vrot.slane %v262_v5, 1  ;;  %v306_v21 = vrot.slane %v258_v1, 1  ;;  %v343_v22 = vshrl.u32 %v258_v1, 16  ;;  %v1696_v1 = vld [vmem:[%s2210_s4 + $0x38] sm:$0xff]  ;;  %v1694_v3 = vld [vmem:[%s2210_s4 + $0x28] sm:$0xff]  ;;  %v1693_v4 = vld [vmem:[%s2210_s4 + $0x20] sm:$0xff] }
  0xbe   :  { %1462 = vmatmul.msk.bf16.vlgmr.msrb.gmra.mxu1 %vm153_vm0, %v383_v7  ;;  %v269_v12 = vrot.slane %v267_v6, 1  ;;  %v419_v14 = vrot.slane %v1971_v8, 6  ;;  %v340_v32 = vrot.slane %v260_v9, 1  ;;  %v346_v35 = vrot.slane %v267_v6, 2  ;;  %v1692_v6 = vld [vmem:[%s2210_s4 + $0x18] sm:$0xff]  ;;  %v1691_v7 = vld [vmem:[%s2210_s4 + $0x10] sm:$0xff] }
  0xbf   :  { %v265_v11 = vor.u32 %v264_v10, %v260_v9  ;;  %v307_v33 = vsel %vm304_vm4, %v305_v18, %v306_v21  ;;  %v345_v34 = vrot.slane %v343_v22, 1  ;;  %v1471_v0 = vor.u32 %v1683_v63, %v1470_v62  ;;  %v1685_v9 = vld [vmem:[%s2209_s3 + $0x24] sm:$0xf]  ;;  %v1488_v10 = vld [vmem:[%s2209_s3 + $0x30] sm:$0xf0]  ;;  %v1690_v21 = vld [vmem:[%s2210_s4 + $0x8] sm:$0xff] }
  0xc0   :  { %440 = vmatpush.bf16.msra.mxu2 %v1911_v24  ;;  %v425_v19 = vsel %vm214_vm1, 0.0, %v419_v14  ;;  %v1681_v22 = vld [vmem:[%s2209_s3 + $0x4] sm:$0xf]  ;;  %v1699_v61 = vld [vmem:[%s2210_s4 + $0x50] sm:$0xff] }
  0xc1   :  { %v1746_v13 = vpop.eup %1745  ;;  %v270_v16 = vsel %vm259_vm3, %v265_v11, %v269_v12  ;;  %619 = vmatpush.bf16.msrb.mxu0 %v1471_v0  ;;  %v1494_v11 = vld [vmem:[%s2209_s3 + $0x28] sm:$0xf]  ;;  %v1491_v12 = vor.u32 %v1685_v9, %v1488_v10  ;;  %v1715_v62 = vld [vmem:[%s2210_s4 + $0xd0] sm:$0xff] }
  0xc2   :  { %v206_v15 = vmul.f32 %v1746_v13, %v202_v39  ;;  %1435 = vmatmul.msk.bf16.vlgmr.msra.gmra.mxu3 %vm153_vm0, %v270_v16  ;;  %v1688_v13 = vld [vmem:[%s2209_s3 + $0x34] sm:$0xf0] }
  0xc3   :  { %470 = vmatpush.bf16.msra.mxu3 %v1923_v26  ;;  %v341_v26 = vrot.slane %v262_v5, 2  ;;  %v1495_v16 = vor.u32 %v1688_v13, %v1494_v11  ;;  %637 = vmatpush.bf16.msrb.mxu1 %v1491_v12  ;;  %v1712_v11 = vld [vmem:[%s2210_s4 + $0xb8] sm:$0xff]  ;;  %v1711_v13 = vld [vmem:[%s2210_s4 + $0xb0] sm:$0xff] }
  0xc4   :  { %v1978_v17 = vadd.f32 %v207_v45, %v206_v15  ;;  %v1496_v15 = vld [vmem:[%s2209_s3 + $0x38] sm:$0xf0] }
  0xc5   :  { %v342_v39 = vor.u32 %v341_v26, %v340_v32  ;;  %968 = vmatpush.bf16.msra.mxu0 %v1696_v1  ;;  %v1682_v32 = vld [vmem:[%s2209_s3 + $0xc] sm:$0xf] }
  0xc6   :  { %v420_v20 = vrot.slane %v1978_v17, 6  ;;  %v1698_v1 = vld [vmem:[%s2210_s4 + $0x48] sm:$0xff] }
  0xc7   :  { %471 = vmatpush.bf16.msra.mxu3 %v1936_v30  ;;  %v347_v30 = vor.u32 %v346_v35, %v345_v34  ;;  %v1689_v35 = vld [vmem:[%s2210_s4] sm:$0xff] }
  0xc8   :  { %v421_v24 = vsel %vm214_vm1, %v419_v14, %v420_v20  ;;  %v426_v28 = vsel %vm214_vm1, %v420_v20, 0.0  ;;  %v1686_v14 = vld [vmem:[%s2209_s3 + $0x2c] sm:$0xf]  ;;  %vm1152_vm1 = vcmask 1042432  }
  0xc9   :  { %v429_v29 = vpack.c.bf16 %v421_v24, %v425_v19  ;;  %v449_v31 = vpack.c.bf16 %v426_v28, %v426_v28  ;;  %v348_v40 = vsel %vm339_vm5, %v342_v39, %v347_v30  ;;  %969 = vmatpush.bf16.msra.mxu0 %v1695_v2  ;;  %v1499_v18 = vor.u32 %v1686_v14, %v1496_v15  ;;  %v1472_v24 = vld [vmem:[%s2209_s3 + $0x10] sm:$0xf0]  ;;  %v1478_v28 = vld [vmem:[%s2209_s3 + $0x8] sm:$0xf] }
  0xca   :  { %v1714_v2 = vld [vmem:[%s2210_s4 + $0xc8] sm:$0xff] }
  0xcb   :  { %1444 = vmatmul.msk.bf16.vlgmr.msrb.gmra.mxu2 %vm153_vm0, %v307_v33  ;;  %v482_v36 = vrot.slane %v429_v29, 1  ;;  %v483_v37 = vrot.slane %v449_v31, 1  ;;  %v452_v41 = vshll.u32 %v429_v29, 16  ;;  %v450_v44 = vshrl.u32 %v429_v29, 16  ;;  %v1480_v33 = vld [vmem:[%s2209_s3 + $0x18] sm:$0xf0] }
  0xcc   :  { %522 = vmatpush.bf16.msrb.mxu2 %v1949_v42  ;;  %v457_v45 = vshll.u32 %v449_v31, 16  ;;  %v507_v48 = vshrl.u32 %v449_v31, 16  ;;  %v532_v56 = vrot.slane %v429_v29, 2  ;;  %v533_v57 = vrot.slane %v449_v31, 2  ;;  %v1684_v31 = vld [vmem:[%s2209_s3 + $0x14] sm:$0xf0] }
  0xcd   :  { %v484_v38 = vsel %vm304_vm4, %v482_v36, %v483_v37  ;;  %v454_v42 = vrot.slane %v452_v41, 1  ;;  %v504_v50 = vrot.slane %v450_v44, 1  ;;  %v505_v51 = vrot.slane %v452_v41, 2  ;;  %970 = vmatpush.bf16.msra.mxu0 %v1694_v3  ;;  %v1704_v36 = vld [vmem:[%s2210_s4 + $0x78] sm:$0xff]  ;;  %v1719_v41 = vld [vmem:[%s2210_s4 + $0xf0] sm:$0xff]  ;;  %v1697_v3 = vld [vmem:[%s2210_s4 + $0x40] sm:$0xff] }
  0xce   :  { %1465 = vmatmul.msk.bf16.vlgmr.msra.gmra.mxu1 %vm153_vm0, %v484_v38  ;;  %v459_v47 = vrot.slane %v457_v45, 1  ;;  %v509_v52 = vrot.slane %v507_v48, 1  ;;  %v510_v53 = vrot.slane %v457_v45, 2  ;;  %v534_v58 = vsel %vm380_vm2, %v532_v56, %v533_v57  ;;  %v1720_v37 = vld [vmem:[%s2210_s4 + $0xf8] sm:$0xff] }
  0xcf   :  { %v455_v46 = vor.u32 %v454_v42, %v450_v44  ;;  %v1479_v26 = vor.u32 %v1684_v31, %v1478_v28  ;;  %v1483_v34 = vor.u32 %v1682_v32, %v1480_v33  ;;  %v2082_v38 = vperm.slane %v1917_v25, 3  ;;  %v1702_v44 = vld [vmem:[%s2210_s4 + $0x68] sm:$0xff] }
  0xd0   :  { %523 = vmatpush.bf16.msrb.mxu2 %v1955_v43  ;;  %v511_v55 = vor.u32 %v510_v53, %v509_v52  ;;  %v1718_v25 = vld [vmem:[%s2210_s4 + $0xe8] sm:$0xff]  ;;  %v1717_v52 = vld [vmem:[%s2210_s4 + $0xe0] sm:$0xff]  ;;  %vm1160_vm2 = vcmask 392192  }
  0xd1   :  { %v460_v43 = vsel %vm259_vm3, %v455_v46, %v459_v47  ;;  %971 = vmatpush.bf16.msra.mxu0 %v1693_v4  ;;  %v224_v42 = vadd.f32 %v2082_v38, %v1959_v49  ;;  %v1713_v4 = vld [vmem:[%s2210_s4 + $0xc0] sm:$0xff]  ;;  %v427_v15 = vadd.f32 %v2082_v38, %v1971_v8  ;;  %vm1279_vm3 = vcmask 1044480  }
  0xd2   :  { %1453 = vmatmul.msk.bf16.vlgmr.msrb.gmra.mxu3 %vm153_vm0, %v348_v40  ;;  %v1703_v40 = vld [vmem:[%s2210_s4 + $0x70] sm:$0xff] }
  0xd3   :  { %544 = vmatpush.bf16.msrb.mxu3 %v1906_v23  ;;  %v506_v23 = vor.u32 %v505_v51, %v504_v50  ;;  %v1701_v51 = vld [vmem:[%s2210_s4 + $0x60] sm:$0xff] }
  0xd5   :  { %972 = vmatpush.bf16.msra.mxu0 %v1692_v6 }
  0xd7   :  { %545 = vmatpush.bf16.msrb.mxu3 %v1928_v27  ;;  %v512_v27 = vsel %vm339_vm5, %v506_v23, %v511_v55  ;;  %v1700_v23 = vld [vmem:[%s2210_s4 + $0x58] sm:$0xff]  ;;  %vm1315_vm5 = vcmask 523264  }
  0xd9   :  { %973 = vmatpush.bf16.msra.mxu0 %v1691_v7 }
  0xdb   :  { %1463 = vmatmul.msk.bf16.vlgmr.msra.gmra.mxu2 %vm153_vm0, %v429_v29  ;;  %v1475_v29 = vor.u32 %v1681_v22, %v1472_v24 }
  0xdc   :  { %656 = vmatpush.bf16.msra.mxu2 %v1495_v16 }
  0xdd   :  { %974 = vmatpush.bf16.msra.mxu0 %v1690_v21  ;;  %638 = vmatpush.bf16.msrb.mxu1 %v1475_v29 }
  0xe0   :  { %657 = vmatpush.bf16.msra.mxu2 %v1479_v26 }
  0xe1   :  { %975 = vmatpush.bf16.msra.mxu0 %v1689_v35  ;;  %987 = vmatpush.bf16.msra.mxu1 %v1704_v36 }
  0xe2   :  { %1464 = vmatmul.msk.bf16.vlgmr.msra.gmra.mxu3 %vm153_vm0, %v460_v43  ;;  %v225_v43 = vadd.f32 %v2082_v38, %v1962_v54  ;;  %v1716_v54 = vld [vmem:[%s2210_s4 + $0xd8] sm:$0xff] }
  0xe3   :  { %675 = vmatpush.bf16.msra.mxu3 %v1499_v18 }
  0xe5   :  { %988 = vmatpush.bf16.msra.mxu1 %v1703_v40  ;;  %v1707_v40 = vld [vmem:[%s2210_s4 + $0x90] sm:$0xff] }
  0xe7   :  { %676 = vmatpush.bf16.msra.mxu3 %v1483_v34 }
  0xe9   :  { %989 = vmatpush.bf16.msra.mxu1 %v1702_v44  ;;  %v1705_v44 = vld [vmem:[%s2210_s4 + $0x80] sm:$0xff] }
  0xeb   :  { %1466 = vmatmul.msk.bf16.vlgmr.msrb.gmra.mxu2 %vm153_vm0, %v512_v27 }
  0xec   :  { %1006 = vmatpush.bf16.msrb.mxu2 %v1712_v11 }
  0xed   :  { %990 = vmatpush.bf16.msra.mxu1 %v1701_v51 }
  0xf0   :  { %1007 = vmatpush.bf16.msrb.mxu2 %v1711_v13 }
  0xf1   :  { %991 = vmatpush.bf16.msra.mxu1 %v1700_v23 }
  0xf2   :  { %1467 = vmatmul.msk.bf16.vlgmr.msrb.gmra.mxu3 %vm153_vm0, %v534_v58 }
  0xf3   :  { %1025 = vmatpush.bf16.msrb.mxu3 %v1720_v37 }
  0xf5   :  { %992 = vmatpush.bf16.msra.mxu1 %v1699_v61 }
  0xf7   :  { %1026 = vmatpush.bf16.msrb.mxu3 %v1719_v41  ;;  %v1706_v41 = vld [vmem:[%s2210_s4 + $0x88] sm:$0xff] }
  0xf9   :  { %993 = vmatpush.bf16.msra.mxu1 %v1698_v1 }
  0xfb   :  { %1027 = vmatpush.bf16.msrb.mxu3 %v1718_v25 }
  0xfd   :  { %994 = vmatpush.bf16.msra.mxu1 %v1697_v3 }
  0xff   :  { %1028 = vmatpush.bf16.msrb.mxu3 %v1717_v52 }
 0x103   :  { %1029 = vmatpush.bf16.msrb.mxu3 %v1716_v54 }
 0x107   :  { %1030 = vmatpush.bf16.msrb.mxu3 %v1715_v62 }
 0x10b   :  { %1031 = vmatpush.bf16.msrb.mxu3 %v1714_v2 }
 0x10f   :  { %1032 = vmatpush.bf16.msrb.mxu3 %v1713_v4 }
 0x13b   :  { %v408_v46 = vpop.f32.mrf.mxu1 }
 0x13e   :  { %v251_v5 = vpop.f32.mrf.mxu2 }
 0x13f   :  { %v256_v45 = vadd.f32 %v251_v5, %v224_v42 }
 0x143   :  { %v410_v63 = vpop.f32.mrf.mxu1 }
 0x145   :  { %v295_v19 = vpop.f32.mrf.mxu3 }
 0x146   :  { %v253_v20 = vpop.f32.mrf.mxu2  ;;  %v300_v47 = vadd.f32 %v295_v19, %v256_v45  ;;  %v428_v19 = vadd.f32 %v2082_v38, %v1978_v17  ;;  %v1710_v38 = vld [vmem:[%s2210_s4 + $0xa8] sm:$0xff] }
 0x147   :  { %v257_v49 = vadd.f32 %v253_v20, %v225_v43  ;;  %1008 = vmatpush.bf16.msrb.mxu2 %v1710_v38 }
 0x14b   :  { %v497_v14 = vpop.f32.mrf.mxu1 }
 0x14d   :  { %v297_v39 = vpop.f32.mrf.mxu3 }
 0x14e   :  { %v332_v30 = vpop.f32.mrf.mxu2  ;;  %v301_v27 = vadd.f32 %v297_v39, %v257_v49  ;;  %v1709_v39 = vld [vmem:[%s2210_s4 + $0xa0] sm:$0xff] }
 0x14f   :  { %v337_v53 = vadd.f32 %v332_v30, %v300_v47  ;;  %1009 = vmatpush.bf16.msrb.mxu2 %v1709_v39  ;;  %v1708_v30 = vld [vmem:[%s2210_s4 + $0x98] sm:$0xff] }
 0x153   :  { %v499_v29 = vpop.f32.mrf.mxu1  ;;  %1010 = vmatpush.bf16.msrb.mxu2 %v1708_v30 }
 0x155   :  { %v373_v48 = vpop.f32.mrf.mxu3 }
 0x156   :  { %v334_v50 = vpop.f32.mrf.mxu2  ;;  %v378_v55 = vadd.f32 %v373_v48, %v337_v53 }
 0x157   :  { %v338_v56 = vadd.f32 %v334_v50, %v301_v27  ;;  %1011 = vmatpush.bf16.msrb.mxu2 %v1707_v40 }
 0x158   :  { %v413_v57 = vadd.f32 %v408_v46, %v378_v55 }
 0x15a   :  { %1747 = vtanh.f32 %v413_v57 }
 0x15b   :  { %1012 = vmatpush.bf16.msrb.mxu2 %v1706_v41 }
 0x15d   :  { %v375_v58 = vpop.f32.mrf.mxu3 }
 0x15e   :  { %v442_v59 = vpop.f32.mrf.mxu2  ;;  %v379_v60 = vadd.f32 %v375_v58, %v338_v56 }
 0x15f   :  { %v447_v18 = vadd.f32 %v442_v59, %v427_v15  ;;  %1013 = vmatpush.bf16.msrb.mxu2 %v1705_v44 }
 0x160   :  { %v414_v0 = vadd.f32 %v410_v63, %v379_v60  ;;  %v1748_v7 = vpop.eup %1747 }
 0x162   :  { %1749 = vtanh.f32 %v414_v0 }
 0x165   :  { %v473_v5 = vpop.f32.mrf.mxu3 }
 0x166   :  { %v444_v6 = vpop.f32.mrf.mxu2  ;;  %v478_v20 = vadd.f32 %v473_v5, %v447_v18 }
 0x167   :  { %v448_v21 = vadd.f32 %v444_v6, %v428_v19 }
 0x168   :  { %v1750_v9 = vpop.eup %1749  ;;  %v502_v28 = vadd.f32 %v497_v14, %v478_v20 }
 0x169   :  { %v556_v10 = vpack.c.bf16 %v1750_v9, %v1748_v7 }
 0x16b   :  { %1500 = vmatmul.msk.bf16.vlgmr.msrb.gmra.mxu0 %vm153_vm0, %v556_v10  ;;  %1502 = vmatmul.msk.bf16.vlgmr.msrb.gmra.mxu1 %vm153_vm0, %v556_v10 }
 0x16c   :  { %1504 = vmatmul.msk.bf16.vlgmr.msra.gmra.mxu2 %vm153_vm0, %v556_v10  ;;  %1506 = vmatmul.msk.bf16.vlgmr.msra.gmra.mxu3 %vm153_vm0, %v556_v10 }
 0x16d   :  { %1138 = vmatpush.msrb.mxu0 %v1750_v9  ;;  %v475_v12 = vpop.f32.mrf.mxu3 }
 0x16e   :  { %v525_v16 = vpop.f32.mrf.mxu2  ;;  %v479_v24 = vadd.f32 %v475_v12, %v448_v21 }
 0x16f   :  { %1139 = vmatpush.msrb.mxu0 %v1748_v7  ;;  %v530_v31 = vadd.f32 %v525_v16, %v502_v28 }
 0x170   :  { %v503_v33 = vadd.f32 %v499_v29, %v479_v24 }
 0x175   :  { %v547_v22 = vpop.f32.mrf.mxu3 }
 0x176   :  { %v527_v32 = vpop.f32.mrf.mxu2  ;;  %v552_v26 = vadd.f32 %v547_v22, %v530_v31 }
 0x177   :  { %v531_v34 = vadd.f32 %v527_v32, %v503_v33 }
 0x178   :  { %1751 = vtanh.f32 %v552_v26 }
 0x17d   :  { %v549_v35 = vpop.f32.mrf.mxu3 }
 0x17e   :  { %v553_v8 = vadd.f32 %v549_v35, %v531_v34  ;;  %v1752_v36 = vpop.eup %1751 }
 0x180   :  { %1753 = vtanh.f32 %v553_v8 }
 0x186   :  { %v1754_v37 = vpop.eup %1753 }
 0x187   :  { %1254 = vmatpush.msrb.mxu1 %v1754_v37  ;;  %1725 = vmatpush.msra.mxu3 %v1754_v37  ;;  %v557_v17 = vpack.c.bf16 %v1754_v37, %v1752_v36 }
 0x189   :  { %1501 = vmatmul.msk.bf16.gmra.mxu0 %vm153_vm0, %v557_v17  ;;  %1503 = vmatmul.msk.bf16.gmra.mxu1 %vm153_vm0, %v557_v17 }
 0x18a   :  { %1505 = vmatmul.msk.bf16.gmra.mxu2 %vm153_vm0, %v557_v17  ;;  %1507 = vmatmul.msk.bf16.gmra.mxu3 %vm153_vm0, %v557_v17 }
 0x18b   :  { %1255 = vmatpush.msrb.mxu1 %v1752_v36  ;;  %1726 = vmatpush.msra.mxu3 %v1752_v36 }
 0x1e8   :  { %v621_v25 = vpop.f32.mrf.mxu0  ;;  %v640_v42 = vpop.f32.mrf.mxu1 }
 0x1e9   :  { %1755 = vtanh.f32 %v621_v25 }
 0x1ea   :  { %1757 = vtanh.f32 %v640_v42 }
 0x1ef   :  { %v659_v45 = vpop.f32.mrf.mxu2  ;;  %v678_v46 = vpop.f32.mrf.mxu3 }
 0x1f0   :  { %v623_v47 = vpop.f32.mrf.mxu0  ;;  %v642_v48 = vpop.f32.mrf.mxu1 }
 0x1f1   :  { %1759 = vtanh.f32 %v623_v47  ;;  %v1756_v50 = vpop.eup %1755 }
 0x1f2   :  { %1761 = vtanh.f32 %v642_v48  ;;  %v1758_v43 = vpop.eup %1757 }
 0x1f3   :  { %1763 = vtanh.f32 %v659_v45 }
 0x1f4   :  { %1765 = vtanh.f32 %v678_v46 }
 0x1f7   :  { %v661_v51 = vpop.f32.mrf.mxu2  ;;  %v680_v52 = vpop.f32.mrf.mxu3 }
 0x1f8   :  { %v1760_v53 = vpop.eup %1759  ;;  %1767 = vtanh.f32 %v661_v51 }
 0x1f9   :  { %v1762_v49 = vpop.eup %1761  ;;  %1769 = vtanh.f32 %v680_v52  ;;  %v704_v23 = vpack.c.bf16 %v1760_v53, %v1756_v50 }
 0x1fa   :  { %v705_v54 = vpack.c.bf16 %v1762_v49, %v1758_v43  ;;  %v1764_v55 = vpop.eup %1763 }
 0x1fb   :  { %976 = vmatmul.bf16.vlgmr.msra.gmra.mxu0 %v704_v23  ;;  %v1766_v27 = vpop.eup %1765 }
 0x1fc   :  { %995 = vmatmul.bf16.vlgmr.msra.gmra.mxu1 %v705_v54 }
 0x1fe   :  { %v1768_v56 = vpop.eup %1767 }
 0x1ff   :  { %v1770_v57 = vpop.eup %1769  ;;  %v706_v58 = vpack.c.bf16 %v1768_v56, %v1764_v55 }
 0x200   :  { %v707_v59 = vpack.c.bf16 %v1770_v57, %v1766_v27 }
 0x201   :  { %1014 = vmatmul.bf16.vlgmr.msrb.gmra.mxu2 %v706_v58 }
 0x202   :  { %1033 = vmatmul.bf16.vlgmr.msrb.gmra.mxu3 %v707_v59 }
 0x206   :  { %v626_v60 = vpop.f32.mrf.mxu0  ;;  %v645_v61 = vpop.f32.mrf.mxu1 }
 0x207   :  { %1771 = vtanh.f32 %v626_v60 }
 0x208   :  { %1773 = vtanh.f32 %v645_v61 }
 0x20d   :  { %v664_v62 = vpop.f32.mrf.mxu2  ;;  %v683_v63 = vpop.f32.mrf.mxu3 }
 0x20e   :  { %v628_v0 = vpop.f32.mrf.mxu0  ;;  %v647_v1 = vpop.f32.mrf.mxu1 }
 0x20f   :  { %1775 = vtanh.f32 %v628_v0  ;;  %v1772_v2 = vpop.eup %1771 }
 0x210   :  { %1777 = vtanh.f32 %v647_v1  ;;  %v1774_v3 = vpop.eup %1773 }
 0x211   :  { %1779 = vtanh.f32 %v664_v62 }
 0x212   :  { %1781 = vtanh.f32 %v683_v63 }
 0x215   :  { %v666_v4 = vpop.f32.mrf.mxu2  ;;  %v685_v5 = vpop.f32.mrf.mxu3 }
 0x216   :  { %v1776_v6 = vpop.eup %1775  ;;  %1783 = vtanh.f32 %v666_v4 }
 0x217   :  { %v1778_v7 = vpop.eup %1777  ;;  %1785 = vtanh.f32 %v685_v5  ;;  %v708_v9 = vpack.c.bf16 %v1776_v6, %v1772_v2 }
 0x218   :  { %v709_v10 = vpack.c.bf16 %v1778_v7, %v1774_v3  ;;  %v1780_v11 = vpop.eup %1779 }
 0x219   :  { %981 = vmatmul.bf16.gmra.mxu0 %v708_v9  ;;  %v1782_v12 = vpop.eup %1781 }
 0x21a   :  { %1000 = vmatmul.bf16.gmra.mxu1 %v709_v10 }
 0x21c   :  { %v1784_v13 = vpop.eup %1783 }
 0x21d   :  { %v1786_v14 = vpop.eup %1785  ;;  %v710_v15 = vpack.c.bf16 %v1784_v13, %v1780_v11 }
 0x21e   :  { %v711_v16 = vpack.c.bf16 %v1786_v14, %v1782_v12 }
 0x21f   :  { %1019 = vmatmul.bf16.gmra.mxu2 %v710_v15 }
 0x220   :  { %1038 = vmatmul.bf16.gmra.mxu3 %v711_v16 }
 0x278   :  { %v977_v18 = vpop.f32.mrf.mxu0 }
 0x279   :  { %v996_v19 = vpop.f32.mrf.mxu1 }
 0x27a   :  { %v997_v22 = vadd.f32 %v996_v19, %v977_v18 }
 0x280   :  { %v979_v24 = vpop.f32.mrf.mxu0 }
 0x281   :  { %v998_v28 = vpop.f32.mrf.mxu1 }
 0x282   :  { %v999_v31 = vadd.f32 %v998_v28, %v979_v24 }
 0x284   :  { %v1015_v20 = vpop.f32.mrf.mxu2 }
 0x285   :  { %v1034_v21 = vpop.f32.mrf.mxu3  ;;  %v1016_v29 = vadd.f32 %v1015_v20, %v997_v22 }
 0x287   :  { %v1035_v33 = vadd.f32 %v1034_v21, %v1016_v29 }
 0x289   :  { %v1045_v8 = vsel %vm1044_vm6, %v1035_v33, -inf }
 0x28c   :  { %v1017_v32 = vpop.f32.mrf.mxu2 }
 0x28d   :  { %v1018_v26 = vadd.f32 %v1017_v32, %v999_v31  ;;  %v1036_v34 = vpop.f32.mrf.mxu3 }
 0x28f   :  { %v1037_v35 = vadd.f32 %v1036_v34, %v1018_v26 }
 0x291   :  { %v1046_v36 = vsel %vm1044_vm6, %v1037_v35, -inf }
 0x292   :  { %v1047_v37 = vmax.f32 %v1045_v8, %v1046_v36 }
 0x294   :  { %v1048_v17 = vrot.slane %v1047_v37, 4 }
 0x296   :  { %v1049_v38 = vmax.f32 %v1047_v37, %v1048_v17  ;;  %v982_v41 = vpop.f32.mrf.mxu0 }
 0x297   :  { %v1001_v44 = vpop.f32.mrf.mxu1 }
 0x298   :  { %v1050_v39 = vrot.slane %v1049_v38, 2  ;;  %v1002_v43 = vadd.f32 %v1001_v44, %v982_v41 }
 0x29a   :  { %v1051_v30 = vmax.f32 %v1049_v38, %v1050_v39 }
 0x29c   :  { %v1052_v40 = vrot.slane %v1051_v30, 1 }
 0x29e   :  { %v1053_v25 = vmax.f32 %v1051_v30, %v1052_v40  ;;  %v984_v51 = vpop.f32.mrf.mxu0 }
 0x29f   :  { %v1003_v52 = vpop.f32.mrf.mxu1 }
 0x2a0   :  { %v1054_v42 = vsub.f32 %v1035_v33, %v1053_v25  ;;  %v1055_v45 = vsub.f32 %v1037_v35, %v1053_v25  ;;  %v1004_v49 = vadd.f32 %v1003_v52, %v984_v51 }
 0x2a2   :  { %v1056_v46 = vmul.f32 1.442695, %v1054_v42  ;;  %v1058_v47 = vmul.f32 1.442695, %v1055_v45  ;;  %v1020_v48 = vpop.f32.mrf.mxu2 }
 0x2a3   :  { %v1039_v50 = vpop.f32.mrf.mxu3  ;;  %v1021_v53 = vadd.f32 %v1020_v48, %v1002_v43 }
 0x2a4   :  { %1787 = vpow2.f32 %v1058_v47 }
 0x2a5   :  { %1789 = vpow2.f32 %v1056_v46  ;;  %v1040_v56 = vadd.f32 %v1039_v50, %v1021_v53 }
 0x2a7   :  { %v1162_v62 = vsel %vm1044_vm6, %v1040_v56, -inf }
 0x2aa   :  { %v1788_v23 = vpop.eup %1787  ;;  %v1022_v54 = vpop.f32.mrf.mxu2 }
 0x2ab   :  { %v1790_v55 = vpop.eup %1789  ;;  %v1061_v27 = vsel %vm1044_vm6, %v1788_v23, 0.0  ;;  %v1023_v57 = vadd.f32 %v1022_v54, %v1004_v49  ;;  %v1041_v58 = vpop.f32.mrf.mxu3 }
 0x2ac   :  { %v1060_v59 = vsel %vm1044_vm6, %v1790_v55, 0.0 }
 0x2ad   :  { %v1042_v60 = vadd.f32 %v1041_v58, %v1023_v57  ;;  %v1062_v61 = vadd.f32 %v1061_v27, %v1060_v59  ;;  %v1723_v57 = vld [vmem:[%s2211_s5 + $0x10] sm:$0xff]  ;;  %v1722_v58 = vld [vmem:[%s2211_s5 + $0x8] sm:$0xff] }
 0x2af   :  { %v1163_v63 = vsel %vm1044_vm6, %v1042_v60, -inf  ;;  %v1063_v0 = vrot.slane %v1062_v61, 4 }
 0x2b0   :  { %v1164_v1 = vmax.f32 %v1162_v62, %v1163_v63 }
 0x2b1   :  { %v1064_v2 = vadd.f32 %v1063_v0, %v1062_v61 }
 0x2b2   :  { %v1165_v3 = vrot.slane %v1164_v1, 4 }
 0x2b3   :  { %v1065_v4 = vrot.slane %v1064_v2, 2 }
 0x2b4   :  { %v1166_v5 = vmax.f32 %v1164_v1, %v1165_v3 }
 0x2b5   :  { %v1066_v6 = vadd.f32 %v1065_v4, %v1064_v2 }
 0x2b6   :  { %v1167_v7 = vrot.slane %v1166_v5, 2 }
 0x2b7   :  { %v1067_v9 = vrot.slane %v1066_v6, 1 }
 0x2b8   :  { %v1168_v10 = vmax.f32 %v1166_v5, %v1167_v7  ;;  %v1721_v7 = vld [vmem:[%s2211_s5] sm:$0xff] }
 0x2b9   :  { %v1068_v11 = vadd.f32 %v1067_v9, %v1066_v6 }
 0x2ba   :  { %v1169_v12 = vrot.slane %v1168_v10, 1 }
 0x2bb   :  { %1791 = vrcp.f32 %v1068_v11  ;;  %v1080_v22 = vand.u32 2147483648, %v1068_v11  ;;  %v1078_v28 = vand.u32 2147483647, %v1068_v11  ;;  %vm1074_vm8 = vweird.f32 %v1068_v11 }
 0x2bc   :  { %v1170_v13 = vmax.f32 %v1168_v10, %v1169_v12 }
 0x2bd   :  { %v1081_v26 = vor.u32 1.1754944e-38, %v1080_v22  ;;  %vm1079_vm10 = vcmp.eq.f32.partialorder %v1078_v28, 8.507059e+37  ;;  %v1799_v28 = vld [vmem:[%s2208_s6] sm:$0xff] }
 0x2be   :  { %v1171_v14 = vsub.f32 %v1040_v56, %v1170_v13  ;;  %v1172_v15 = vsub.f32 %v1042_v60, %v1170_v13  ;;  %v1724_v56 = vld [vmem:[%s2211_s5 + $0x18] sm:$0xff] }
 0x2bf   :  { %1323 = vmatpush.bf16.msra.mxu2 %v1724_v56 }
 0x2c0   :  { %v1173_v16 = vmul.f32 1.442695, %v1171_v14  ;;  %v1175_v18 = vmul.f32 1.442695, %v1172_v15 }
 0x2c1   :  { %v1792_v19 = vpop.eup %1791 }
 0x2c2   :  { %1793 = vpow2.f32 %v1175_v18  ;;  %v1070_v20 = vmul.f32 %v1792_v19, %v1068_v11  ;;  %vm1075_vm7 = vweird.f32 %v1792_v19  ;;  %v69_v11 = vld [vmem:[%s2212_s1] sm:$0x1f] }
 0x2c3   :  { %1795 = vpow2.f32 %v1173_v16  ;;  %vm1076_vm9 = vmor %vm1074_vm8, %vm1075_vm7  ;;  %1324 = vmatpush.bf16.msra.mxu2 %v1723_v57  ;;  %vm1354_vm7 = vcmask 6144  }
 0x2c4   :  { %v1071_v21 = vsub.f32 1.0, %v1070_v20 }
 0x2c6   :  { %v1072_v24 = vmul.f32 %v1792_v19, %v1071_v21 }
 0x2c7   :  { %1325 = vmatpush.bf16.msra.mxu2 %v1722_v58 }
 0x2c8   :  { %v1794_v29 = vpop.eup %1793  ;;  %v1073_v31 = vadd.f32 %v1792_v19, %v1072_v24 }
 0x2c9   :  { %v1796_v32 = vpop.eup %1795  ;;  %v1178_v33 = vsel %vm1044_vm6, %v1794_v29, 0.0 }
 0x2ca   :  { %v1077_v34 = vsel %vm1076_vm9, %v1792_v19, %v1073_v31  ;;  %v1177_v35 = vsel %vm1044_vm6, %v1796_v32, 0.0  ;;  %vm1344_vm6 = vcmask 1047557  }
 0x2cb   :  { %v1082_v8 = vsel %vm1079_vm10, %v1081_v26, %v1077_v34  ;;  %v1179_v36 = vadd.f32 %v1178_v33, %v1177_v35  ;;  %1326 = vmatpush.bf16.msra.mxu2 %v1721_v7 }
 0x2cc   :  { %v1083_v37 = vmul.f32 %v1790_v55, %v1082_v8  ;;  %v1084_v40 = vmul.f32 %v1788_v23, %v1082_v8 }
 0x2cd   :  { %v1180_v17 = vrot.slane %v1179_v36, 4 }
 0x2ce   :  { %1085 = vxpose.xlu1.b32.start [1/2] (short) (narrow) %v1083_v37, 16 }
 0x2cf   :  { %v1181_v38 = vadd.f32 %v1180_v17, %v1179_v36 }
 0x2d1   :  { %v1182_v39 = vrot.slane %v1181_v38, 2 }
 0x2d3   :  { %v1183_v30 = vadd.f32 %v1182_v39, %v1181_v38  ;;  %v28_v38 = vld [vmem:[%s2208_s6 + $0x8] sm:$0x7f] }
 0x2d5   :  { %v1184_v41 = vrot.slane %v1183_v30, 1 }
 0x2d6   :  { %1086 = vxpose.xlu1.b32.end [2/2] (short) (narrow) %v1084_v40, 16 }
 0x2d7   :  { %v1185_v44 = vadd.f32 %v1184_v41, %v1183_v30 }
 0x2d9   :  { %1797 = vrcp.f32 %v1185_v44  ;;  %v1197_v46 = vand.u32 2147483648, %v1185_v44  ;;  %v1195_v48 = vand.u32 2147483647, %v1185_v44  ;;  %vm1191_vm12 = vweird.f32 %v1185_v44 }
 0x2db   :  { %v1198_v43 = vor.u32 1.1754944e-38, %v1197_v46  ;;  %vm1196_vm14 = vcmp.eq.f32.partialorder %v1195_v48, 8.507059e+37 }
 0x2df   :  { %v1798_v25 = vpop.eup %1797 }
 0x2e0   :  { %v1187_v42 = vmul.f32 %v1798_v25, %v1185_v44  ;;  %vm1192_vm11 = vweird.f32 %v1798_v25 }
 0x2e1   :  { %vm1193_vm13 = vmor %vm1191_vm12, %vm1192_vm11 }
 0x2e2   :  { %v1188_v45 = vsub.f32 1.0, %v1187_v42 }
 0x2e4   :  { %v1189_v47 = vmul.f32 %v1798_v25, %v1188_v45 }
 0x2e6   :  { %v1190_v50 = vadd.f32 %v1798_v25, %v1189_v47 }
 0x2e8   :  { %v1194_v51 = vsel %vm1193_vm13, %v1798_v25, %v1190_v50 }
 0x2e9   :  { %v1199_v52 = vsel %vm1196_vm14, %v1198_v43, %v1194_v51 }
 0x2ea   :  { %v1200_v53 = vmul.f32 %v1796_v32, %v1199_v52  ;;  %v1201_v49 = vmul.f32 %v1794_v29, %v1199_v52  ;;  %v1290_v29 = vperm.slane %v1799_v28, 4 }
 0x2ec   :  { %1202 = vxpose.xlu0.b32.start [1/2] (short) (narrow) %v1200_v53, 16 }
 0x2f4   :  { %1203 = vxpose.xlu0.b32.end [2/2] (short) (narrow) %v1201_v49, 16 }
 0x372   :  { %v1101_v23 = vpop.trf.xlu1 }
 0x373   :  { %1636 = vmatmul.msk.f32.vlgmr.msrb.gmra.mxu0 %vm1117_vm15, %v1101_v23 }
 0x37a   :  { %v1102_v54 = vpop.trf.xlu1 }
 0x37b   :  { %1637 = vmatmul.msk.f32.gmra.mxu0 %vm1117_vm15, %v1102_v54 }
 0x390   :  { %v1218_v55 = vpop.trf.xlu0 }
 0x391   :  { %1638 = vmatmul.msk.f32.vlgmr.msrb.gmra.mxu1 %vm1117_vm15, %v1218_v55 }
 0x398   :  { %v1219_v27 = vpop.trf.xlu0 }
 0x399   :  { %1639 = vmatmul.msk.f32.vlgmr.msra.gmra.mxu3 %vm1117_vm15, %v1219_v27 }
 0x3f0   :  { %v1141_v59 = vpop.f32.mrf.mxu0 }
 0x3f1   :  { %v1153_v3 = vrot.slane %v1141_v59, 5 }
 0x3f8   :  { %v1144_v0 = vpop.f32.mrf.mxu0 }
 0x3f9   :  { %v1154_v4 = vrot.slane %v1144_v0, 5 }
 0x3fb   :  { %v1155_v5 = vsel %vm1152_vm1, %v1153_v3, %v1154_v4 }
 0x3fc   :  { %v1734_v6 = vpack.i.bf16 %v1155_v5, %v1141_v59 }
 0x40e   :  { %v1257_v60 = vpop.f32.mrf.mxu1 }
 0x40f   :  { %v1268_v62 = vrot.slane %v1257_v60, 5 }
 0x41c   :  { %v1260_v61 = vpop.f32.mrf.mxu3 }
 0x41d   :  { %v1269_v63 = vrot.slane %v1260_v61, 5 }
 0x41f   :  { %v1270_v1 = vsel %vm1152_vm1, %v1268_v62, %v1269_v63 }
 0x420   :  { %v1729_v2 = vpack.i.bf16 %v1270_v1, %v1257_v60 }
 0x422   :  { %1730 = vrot.lane.b32.xlu2 %v1729_v2, %s1800_s11 }
 0x42a   :  { %1735 = vrot.lane.b32.xlu2 %v1734_v6, %s1800_s11 }
 0x47c   :  { %v1731_v9 = vpop.permute.xlu2 %1730 }
 0x47d   :  { %v1732_v10 = vunpack.i.l.bf16 %v1731_v9  ;;  %v1733_v12 = vunpack.i.h.bf16 %v1731_v9 }
 0x47f   :  { %v1274_v13 = vsel %vm153_vm0, %v69_v11, %v1732_v10 }
 0x480   :  { %v1275_v14 = vsel %vm1160_vm2, %v1274_v13, %v1733_v12 }
 0x481   :  { %v1277_v19 = vrot.slane %v1275_v14, 3 }
 0x484   :  { %v1736_v15 = vpop.permute.xlu2 %1735 }
 0x485   :  { %v1738_v16 = vunpack.i.h.bf16 %v1736_v15  ;;  %v1737_v18 = vunpack.i.l.bf16 %v1736_v15 }
 0x487   :  { %v1159_v20 = vsel %vm153_vm0, %v69_v11, %v1737_v18  ;;  %vm1352_vm0 = vcmask 7173  }
 0x488   :  { %v1161_v21 = vsel %vm1160_vm2, %v1159_v20, %v1738_v16 }
 0x489   :  { %v1280_v22 = vsel %vm1279_vm3, %v1161_v21, %v1277_v19 }
 0x48a   :  { %v1281_v24 = vpack.c.bf16 %v1277_v19, %v1280_v22 }
 0x48c   :  { %1656 = vmatmul.msk.bf16.vlgmr.msra.gmra.mxu2 %vm1315_vm5, %v1281_v24 }
 0x50f   :  { %v1328_v31 = vpop.f32.mrf.mxu2 }
 0x510   :  { %v1329_v32 = vadd.f32 %v1328_v31, %v1290_v29 }
 0x512   :  { %v1333_v33 = vmax.f32 %v1329_v32, 0.0 }
 0x514   :  { %v1337_v26 = vrot.slane %v1333_v33, 3 }
 0x516   :  { %v1342_v34 = vmul.f32 %v1799_v28, %v1337_v26 }
 0x517   :  { %v1330_v35 = vpop.f32.mrf.mxu2 }
 0x518   :  { %v1331_v8 = vadd.f32 %v1330_v35, %v1290_v29  ;;  %v1345_v36 = vsel %vm1344_vm6, %v1342_v34, 0.0 }
 0x519   :  { %1346 = vadd.xlane.f32.xlu0 %v1345_v36 }
 0x51a   :  { %v1334_v37 = vmax.f32 %v1331_v8, 0.0 }
 0x51c   :  { %v1338_v17 = vrot.slane %v1334_v37, 3 }
 0x51e   :  { %v1339_v39 = vsel %vm1279_vm3, %v1337_v26, %v1338_v17 }
 0x51f   :  { %v1343_v30 = vmul.f32 %v1339_v39, %v28_v38 }
 0x521   :  { %v1349_v40 = vsel %vm304_vm4, %v1343_v30, 0.0 }
 0x522   :  { %1350 = vadd.xlane.f32.xlu1 %v1349_v40 }
 0x58c   :  { %v1347_v41 = vpop.xlane.xlu0 %1346 }
 0x58d   :  { %1353 = vst.msk [vmem:[%s2213_s7 - $0x5] sm:$0xe0] %vm1352_vm0, %v1347_v41 }
 0x595   :  { %v1351_v44 = vpop.xlane.xlu1 %1350 }
 0x596   :  { %1355 = vst.msk [vmem:[%s2213_s7 + $0x3] sm:$0x7f] %vm1354_vm7, %v1351_v44 }

</bundles_post_ra>
